<compile_context>
chip_gen: v6e
topology: v6e:2x2x1
jax: 0.10.0
libtpu: 0.0.40
codegen_flags: <defaults>
</compile_context>

<pallas_src>
import functools

import jax
import jax.numpy as jnp
from jax.experimental import pallas as pl
from jax.experimental.pallas import tpu as pltpu


def _loc_attn_kernel(x_ref, d_ref, p_ref, o_ref, *, no_sigmoid: bool):
    # x_ref/d_ref/o_ref: (TILE_N, TILE_HW) block; p_ref: (1, TILE_HW) shared patch.
    out = x_ref[...] * jnp.maximum(d_ref[...], p_ref[...])   # patch broadcasts over rows
    if not no_sigmoid:
        out = jax.nn.sigmoid(out)
    o_ref[...] = out.astype(o_ref.dtype)


def _round_down_8(x):
    return max(8, (x // 8) * 8)


def location_attention_double_layer(input_tensor, dom_atten, patch_matrix,
                                    no_sigmoid=False, block_bytes=None):
    """input_tensor, dom_atten: (bt, c, h, w); patch_matrix: (1, h, w)."""
    bt, c, h, w = input_tensor.shape
    assert patch_matrix.shape == (1, h, w), "kernel_size must match spatial dims"
    n = bt * c
    hw = h * w
    dtype_bytes = jnp.dtype(input_tensor.dtype).itemsize
    patch_bytes_per_lane = jnp.dtype(patch_matrix.dtype).itemsize

    # Physical VMEM capacity (v7x: 64 MiB/TC, v5e/v6e: 128 MiB).
    try:
        vmem_cap = int(getattr(pltpu.get_tpu_info(), "vmem_capacity_bytes", 64 << 20))
    except Exception:  # conservative fallback
        vmem_cap = 64 << 20

    if block_bytes is None:
        # ~vmem/16 per streamed block: 3 streams x 2 pipeline buffers = 3/8 of
        # VMEM, leaving ample headroom for compiler scratch.
        #   v7x (64 MiB)  -> 4 MiB blocks
        #   v5e/v6e (128) -> 8 MiB blocks
        block_bytes = min(max(2 << 20, vmem_cap // 16), 8 << 20)

    # Lane-dense 2-D layout: rows = bt*c (sublanes), lanes = h*w (fast axis).
    x_flat = input_tensor.reshape(n, hw)
    d_flat = dom_atten.reshape(n, hw)
    p_flat = patch_matrix.reshape(1, hw)

    # ---- Lane (HW) tiling: only when even 8 rows x hw would blow the block
    # budget, and only if hw is a multiple of 128 (keeps the (8,128) rule).
    if 8 * hw * dtype_bytes > block_bytes and hw % 128 == 0:
        lanes = max(128, ((block_bytes // (8 * dtype_bytes)) // 128) * 128)
        tile_hw = min(hw, lanes)
    else:
        # Full lane extent per block (legal even when hw % 128 != 0).
        tile_hw = hw
    grid_hw = pl.cdiv(hw, tile_hw)

    # ---- Row tiling: fill the byte budget, rows a multiple of 8, and force
    # at least 2 grid steps along rows when n > 8 so both v7x TCs get work.
    max_rows = _round_down_8(max(8, block_bytes // max(tile_hw * dtype_bytes, 1)))
    tile_n = min(max_rows, ((n + 7) // 8) * 8)
    if n > 8:
        tile_n = min(tile_n, _round_down_8((n + 1) // 2))
    grid_n = pl.cdiv(n, tile_n)

    # Explicit VMEM budget: 3 streams (x, d, out) double-buffered + patch,
    # plus headroom; never above physical capacity.
    block_nbytes = tile_n * tile_hw * dtype_bytes
    vmem_limit = min(vmem_cap,
                     int(3 * 2 * block_nbytes
                         + 2 * tile_hw * patch_bytes_per_lane
                         + (8 << 20)))

    kernel = functools.partial(_loc_attn_kernel, no_sigmoid=no_sigmoid)

    cost = pl.CostEstimate(
        flops=2 * n * hw,                                    # max + mul
        transcendentals=0 if no_sigmoid else n * hw,         # sigmoid -> EUP
        bytes_accessed=3 * n * hw * dtype_bytes + hw * patch_bytes_per_lane,
    )

    out_flat = pl.pallas_call(
        kernel,
        out_shape=jax.ShapeDtypeStruct((n, hw), input_tensor.dtype),
        grid_spec=pltpu.PrefetchScalarGridSpec(
            num_scalar_prefetch=0,
            grid=(grid_n, grid_hw),
            in_specs=[
                pl.BlockSpec((tile_n, tile_hw), lambda i, j: (i, j)),  # input tile
                pl.BlockSpec((tile_n, tile_hw), lambda i, j: (i, j)),  # dom_atten tile
                pl.BlockSpec((1, tile_hw), lambda i, j: (0, j)),       # shared patch
            ],
            out_specs=pl.BlockSpec((tile_n, tile_hw), lambda i, j: (i, j)),
        ),
        compiler_params=pltpu.CompilerParams(
            dimension_semantics=("parallel", "parallel"),
            vmem_limit_bytes=vmem_limit,
        ),
        cost_estimate=cost,
    )(x_flat, d_flat, p_flat)

    # TODO(synk): if upstream activations are already bf16, keep the stream in
    # bf16 (halves HBM bytes ~= 2x wall-clock) instead of a wrapper-side cast.
    return out_flat.reshape(bt, c, h, w)


def _reference(input_tensor, dom_atten, patch_matrix, no_sigmoid=False):
    bt, c, h, w = input_tensor.shape
    x = input_tensor.reshape(-1, h, w)
    d = dom_atten.reshape(-1, h, w)
    max_att = jnp.maximum(d, patch_matrix)  # broadcast (1,h,w) -> (bt*c,h,w)
    out = x * max_att
    if not no_sigmoid:
        out = jax.nn.sigmoid(out)
    return out.reshape(bt, c, h, w)


if __name__ == "__main__":
    key = jax.random.PRNGKey(0)

    # Small shapes consistent with the module's forward:
    #   (2,4,16,16): n=8,  hw=256  -> lane-dense, single-ish block
    #   (3,5,16,16): n=15, hw=256  -> ragged last row-block (masked store)
    #   (1,4,16,16): n=4 < 8       -> block larger than array (masked)
    #   (2,4,10,10): hw=100        -> non-128-multiple lanes, full-extent block
    cases = [
        (2, 4, 16, 16),
        (3, 5, 16, 16),
        (1, 4, 16, 16),
        (2, 4, 10, 10),
    ]

    for bt, c, h, w in cases:
        key, k1, k2, k3 = jax.random.split(key, 4)
        input_tensor = jax.random.normal(k1, (bt, c, h, w), dtype=jnp.float32)
        dom_atten = jax.random.normal(k2, (bt, c, h, w), dtype=jnp.float32)
        # Deterministic init of the learnable parameter (torch.randn equivalent).
        patch_matrix = jax.random.normal(k3, (1, h, w), dtype=jnp.float32)

        for no_sigmoid in (False, True):
            out = location_attention_double_layer(
                input_tensor, dom_atten, patch_matrix, no_sigmoid=no_sigmoid)
            out = jax.block_until_ready(out)
            ref = _reference(input_tensor, dom_atten, patch_matrix,
                             no_sigmoid=no_sigmoid)
            assert out.shape == (bt, c, h, w)
            assert jnp.allclose(out, ref, atol=1e-6, rtol=1e-6), (
                f"mismatch (shape={(bt, c, h, w)}, no_sigmoid={no_sigmoid})")

    print("KERNEL_OK")
</pallas_src>

<mosaic_0001>
module attributes {stable_mosaic.version = 11 : i64} {
  func.func @_loc_attn_kernel(%arg0: i32, %arg1: i32, %arg2: memref<8x256xf32, #tpu.memory_space<vmem>>, %arg3: memref<8x256xf32, #tpu.memory_space<vmem>>, %arg4: memref<1x256xf32, #tpu.memory_space<vmem>>, %arg5: memref<8x256xf32, #tpu.memory_space<vmem>>) attributes {dimension_semantics = [#tpu.dimension_semantics<parallel>, #tpu.dimension_semantics<parallel>], iteration_bounds = array<i64: 1, 1>, scalar_prefetch = 0 : i64, scratch_operands = 0 : i64, tpu.core_type = #tpu.core_type<tc>, window_params = [{transform_indices = @transform_0, window_bounds = array<i64: 8, 256>}, {transform_indices = @transform_1, window_bounds = array<i64: 8, 256>}, {transform_indices = @transform_2, window_bounds = array<i64: 1, 256>}, {transform_indices = @transform_3, window_bounds = array<i64: 8, 256>}]} {
    %c0 = arith.constant 0 : index
    %c0_0 = arith.constant 0 : index
    %0 = vector.load %arg2[%c0, %c0_0] : memref<8x256xf32, #tpu.memory_space<vmem>>, vector<8x256xf32>
    %c0_1 = arith.constant 0 : index
    %c0_2 = arith.constant 0 : index
    %1 = vector.load %arg3[%c0_1, %c0_2] : memref<8x256xf32, #tpu.memory_space<vmem>>, vector<8x256xf32>
    %c0_3 = arith.constant 0 : index
    %c0_4 = arith.constant 0 : index
    %2 = vector.load %arg4[%c0_3, %c0_4] : memref<1x256xf32, #tpu.memory_space<vmem>>, vector<1x256xf32>
    %3 = vector.broadcast %2 : vector<1x256xf32> to vector<8x256xf32>
    %4 = arith.maximumf %1, %3 : vector<8x256xf32>
    %5 = arith.mulf %0, %4 : vector<8x256xf32>
    %6 = arith.negf %5 : vector<8x256xf32>
    %7 = math.exp %6 : vector<8x256xf32>
    %cst = arith.constant 1.000000e+00 : f32
    %8 = vector.broadcast %cst : f32 to vector<8x256xf32>
    %9 = arith.addf %8, %7 : vector<8x256xf32>
    %10 = arith.divf %8, %9 : vector<8x256xf32>
    %c0_5 = arith.constant 0 : index
    %c0_6 = arith.constant 0 : index
    %11 = vector.load %arg5[%c0_5, %c0_6] : memref<8x256xf32, #tpu.memory_space<vmem>>, vector<8x256xf32>
    tpu.vector_store %arg5[%c0_5, %c0_6], %10 {strides = array<i32>} : memref<8x256xf32, #tpu.memory_space<vmem>>, vector<8x256xf32>,
    return
  }
  func.func @transform_0(%arg0: i32, %arg1: i32) -> (i32, i32) {
    %c0_i32 = arith.constant 0 : i32
    return %arg0, %arg1 : i32, i32
  }
  func.func @transform_1(%arg0: i32, %arg1: i32) -> (i32, i32) {
    %c0_i32 = arith.constant 0 : i32
    return %arg0, %arg1 : i32, i32
  }
  func.func @transform_2(%arg0: i32, %arg1: i32) -> (i32, i32) {
    %c0_i32 = arith.constant 0 : i32
    %c0_i32_0 = arith.constant 0 : i32
    return %c0_i32, %arg1 : i32, i32
  }
  func.func @transform_3(%arg0: i32, %arg1: i32) -> (i32, i32) {
    %c0_i32 = arith.constant 0 : i32
    return %arg0, %arg1 : i32, i32
  }
}

</mosaic_0001>

<bundles_post_ra>
// kernel: tpu_custom_call.1
= control target key start
LH: loop header
LB: loop body
LE: loop exit
PB: predicated region body
PF: predicated region fallthrough
CT: control target
= control target key end

     0   :  { %8 = vsyncpa [#allocation3], 0  ;;  %s203_s0 = inlined_call_operand.hbm [shape: f32[8,256], index: 0, kind: input, shape index: {}]   ;;  %s204_s1 = inlined_call_operand.hbm [shape: f32[8,256], index: 1, kind: input, shape index: {}]   ;;  %s205_s2 = inlined_call_operand.vmem [shape: f32[1,256], index: 2, kind: input, shape index: {}]   ;;  %s206_s3 = inlined_call_operand.hbm [shape: f32[8,256], index: 3, kind: output, shape index: {}]  }
   0x1   :  { %9 = vsyncpa [#allocation6], 0 }
   0x2   :  { %10 = vsyncpa [#allocation4], 0  ;;  %s168_s12 = smov [#allocation2]   ;;  %s169_s14 = smov [#allocation5]  }
   0x3   :  { %s17_s13 = sshll.u32 %s168_s12, 4  ;;  %s27_s15 = sshll.u32 %s169_s14, 4  ;;  %s18_s13 = int_to_ptr.vmem [resolvable:$true] %s17_s13  ;;  %s28_s15 = int_to_ptr.vmem [resolvable:$true] %s27_s15 }
   0x4   :  { %s110_s16 = scalar_lea.vmem %s18_s13, 256  ;;  %p115_p1 = scmp.lt.s32.totalorder %s18_s13, %s18_s13 }
   0x5   :  { %p111_p0 = scmp.ne.s32.totalorder %s18_s13, %s110_s16  ;;  %p116_p2 = scmp.lt.s32.totalorder %s110_s16, %s110_s16 }
   0x7   :  { %p117_p3 = por %p116_p2, %p115_p1 }
   0x9   :  { %p118_p4 = pnand %p117_p3, %p111_p0 }
   0xb   :  { %121 = shalt.err (!%p118_p4)
}
   0xc   :  { %20 = dma.hbm_to_vmem [thread:$0]  %s203_s0, 256, %s18_s13, [#allocation3]  }
   0xd   :  { %s130_s19 = scalar_lea.vmem %s28_s15, 256  ;;  %p135_p6 = scmp.lt.s32.totalorder %s28_s15, %s28_s15 }
   0xe   :  { %p131_p5 = scmp.ne.s32.totalorder %s28_s15, %s130_s19  ;;  %p136_p7 = scmp.lt.s32.totalorder %s130_s19, %s130_s19 }
  0x10   :  { %p137_p8 = por %p136_p7, %p135_p6 }
  0x12   :  { %p138_p9 = pnand %p137_p8, %p131_p5 }
  0x14   :  { %141 = shalt.err (!%p138_p9)
}
  0x15   :  { %30 = dma.hbm_to_vmem [thread:$0]  %s204_s1, 256, %s28_s15, [#allocation6]  }
  0x16   :  { %162 = dma.done.wait [#allocation3], 256  }
  0x17   :  { %163 = vsyncadd [#allocation3], 4294967040 }
  0x18   :  { %164 = dma.done.wait [#allocation6], 256  }
  0x19   :  { %165 = vsyncadd [#allocation6], 4294967040  ;;  %v45_v0 = vlaneseq  ;;  %v41_v4 = vld [vmem:[#allocation5] sm:$0xff]  ;;  %v43_v5 = vld [vmem:[%s205_s2] sm:$0x3]  ;;  %s170_s1 = smov [#allocation7]  }
  0x1a   :  { %v42_v7 = vld [vmem:[#allocation5 + $0x8] sm:$0xff]  ;;  %v39_v9 = vld [vmem:[#allocation2] sm:$0xff]  ;;  %v40_v10 = vld [vmem:[#allocation2 + $0x8] sm:$0xff]  ;;  %s79_s2 = sshll.u32 %s170_s1, 4  ;;  %s80_s2 = int_to_ptr.vmem [resolvable:$true] %s79_s2 }
  0x1b   :  { %v46_v1 = vshrl.u32 %v45_v0, 7  ;;  %s142_s23 = scalar_lea.vmem %s80_s2, 256  ;;  %p147_p11 = scmp.lt.s32.totalorder %s80_s2, %s80_s2 }
  0x1c   :  { %p143_p10 = scmp.ne.s32.totalorder %s80_s2, %s142_s23  ;;  %p148_p12 = scmp.lt.s32.totalorder %s142_s23, %s142_s23 }
  0x1d   :  { %v47_v2 = vsub.s32 0, %v46_v1  ;;  %v51_v3 = vsub.s32 1, %v46_v1 }
  0x1e   :  { %p149_p13 = por %p148_p12, %p147_p11 }
  0x1f   :  { %v48_v6 = vrot.slane %v43_v5, %v47_v2  ;;  %v52_v8 = vrot.slane %v43_v5, %v51_v3 }
  0x20   :  { %p150_p0 = pnand %p149_p13, %p143_p10 }
  0x21   :  { %v55_v11 = vmax.f32 %v41_v4, %v48_v6  ;;  %v56_v12 = vmax.f32 %v42_v7, %v52_v8 }
  0x23   :  { %v57_v13 = vmul.f32 %v55_v11, %v39_v9  ;;  %v58_v14 = vmul.f32 %v56_v12, %v40_v10 }
  0x25   :  { %v89_v15 = vmul.f32 -1.442695, %v57_v13  ;;  %v90_v16 = vmul.f32 -1.442695, %v58_v14 }
  0x27   :  { %94 = vpow2.f32 %v89_v15 }
  0x28   :  { %96 = vpow2.f32 %v90_v16 }
  0x34   :  { %v95_v17 = vpop.eup %94 }
  0x35   :  { %v97_v18 = vpop.eup %96  ;;  %v65_v19 = vadd.f32 1.0, %v95_v17 }
  0x36   :  { %v66_v20 = vadd.f32 1.0, %v97_v18 }
  0x37   :  { %98 = vrcp.f32 %v65_v19 }
  0x38   :  { %100 = vrcp.f32 %v66_v20 }
  0x44   :  { %v99_v21 = vpop.eup %98 }
  0x45   :  { %v101_v22 = vpop.eup %100  ;;  %71 = vst [vmem:[#allocation7] sm:$0xff] %v99_v21 }
  0x46   :  { %72 = vst [vmem:[#allocation7 + $0x8] sm:$0xff] %v101_v22 }
  0x47   :  { %153 = shalt.err (!%p150_p0)
}
  0x48   :  { %82 = dma.vmem_to_hbm [thread:$0]  %s80_s2, 256, %s206_s3, [#allocation4]  }
  0x49   :  { %166 = dma.done.wait [#allocation4], 256  }
  0x4a   :  { %167 = vsyncadd [#allocation4], 4294967040 }
  0x4b   :  { %86 = vsyncpa [#allocation3], 1 }
  0x4c   :  { %87 = vsyncpa [#allocation6], 1 }
  0x4d   :  { %88 = vsyncpa [#allocation4], 1 }

</bundles_post_ra>
